<compile_context>
chip_gen: v7x
topology: tpu7x:2x2x1
jax: 0.10.0
libtpu: 0.0.40
codegen_flags: <defaults>
</compile_context>

<pallas_src>
import jax
import jax.numpy as jnp
import numpy as np
from jax.experimental import pallas as pl
from jax.experimental.pallas import tpu as pltpu


def _round_up(x, m):
    return ((x + m - 1) // m) * m


def _sigmoid(x):
    # hand-written so the Pallas kernel and the bf16 mirror use identical math
    return 1.0 / (1.0 + jnp.exp(-x))


def _dot_bf(x, w_bf16):
    # bf16 operands, f32 accumulation: native MXU rate on v5e/v6e/v7x
    return jnp.dot(x.astype(jnp.bfloat16), w_bf16, preferred_element_type=jnp.float32)


# --------------------------------- kernels --------------------------------- #

def _emlp_gated_kernel(eq_ref, inv_ref, w1i_ref, w1l_ref, b1_ref,
                       w2_ref, b2_ref, wc_ref, wa_ref, out_ref):
    # eq_ref / out_ref: [TN, 3*E]   inv_ref: [TN, d_inv]   weights: bf16, biases f32
    E = wc_ref.shape[0]
    eq = eq_ref[...]                                     # caller dtype (f32 or bf16)
    e0, e1, e2 = eq[:, 0:E], eq[:, E:2 * E], eq[:, 2 * E:3 * E]
    e0f = e0.astype(jnp.float32)
    e1f = e1.astype(jnp.float32)
    e2f = e2.astype(jnp.float32)
    lengths = jnp.sqrt(e0f * e0f + e1f * e1f + e2f * e2f)        # [TN, E] f32

    # split-W1: no cat(invs, lengths) materialization
    h = (_dot_bf(inv_ref[...], w1i_ref[...])
         + _dot_bf(lengths, w1l_ref[...])
         + b1_ref[...])
    h = h * _sigmoid(h)                                          # SiLU
    gate = _sigmoid(_dot_bf(h, w2_ref[...]) + b2_ref[...])       # [TN, E] f32
    gate_bf = gate.astype(jnp.bfloat16)

    outs = []
    for ec in (e0, e1, e2):
        proj = _dot_bf(ec, wc_ref[...])                          # [TN, E] f32
        gated = proj.astype(jnp.bfloat16) * gate_bf              # bf16 gating -> MXU
        outs.append(jnp.dot(gated, wa_ref[...],
                            preferred_element_type=jnp.float32))
    out_ref[...] = jnp.concatenate(outs, axis=-1).astype(out_ref.dtype)


def _emlp_original_kernel(eq_ref, inv_ref, w1_ref, b1_ref, w2a_ref, b2a_ref,
                          wcs_ref, out_ref):
    # wcs_ref: [1, E] f32 = column-sums of coord_proj weight
    # w2a/b2a: folded (W2 @ Wa, b2 @ Wa)
    E = wcs_ref.shape[1]
    eq = eq_ref[...]                                             # [TN, 3*E]
    h = _dot_bf(inv_ref[...], w1_ref[...]) + b1_ref[...]
    h = h * _sigmoid(h)                                          # SiLU
    ga = _dot_bf(h, w2a_ref[...]) + b2a_ref[...]                 # [TN, E] f32

    wcs = wcs_ref[...]                                           # [1, E]
    outs = []
    for c in range(3):
        ec = eq[:, c * E:(c + 1) * E].astype(jnp.float32)
        s = jnp.sum(ec * wcs, axis=-1, keepdims=True)            # [TN, 1]
        outs.append(s * ga)
    out_ref[...] = jnp.concatenate(outs, axis=-1).astype(out_ref.dtype)


# ------------------------------ weight prep --------------------------------- #

def prepare_params(params, d_inv, original):
    """Pre-cast weights to bf16 / fold matmuls; shared by kernel wrapper and mirror."""
    bf = jnp.bfloat16
    if original:
        w2a = jnp.dot(params["w2"], params["wa"])                 # [E, E] f32 fold
        b2a = jnp.dot(params["b2"], params["wa"])                 # [1, E] f32 fold
        wcs = jnp.sum(params["wc"], axis=1).reshape(1, -1)        # [1, E] f32
        return dict(w1=params["w1"].astype(bf), b1=params["b1"],
                    w2a=w2a.astype(bf), b2a=b2a, wcs=wcs)
    return dict(w1i=params["w1"][:d_inv].astype(bf),              # rows acting on invs
                w1l=params["w1"][d_inv:].astype(bf),              # rows acting on lengths
                b1=params["b1"],
                w2=params["w2"].astype(bf), b2=params["b2"],
                wc=params["wc"].astype(bf), wa=params["wa"].astype(bf))


# --------------------------------- wrapper ---------------------------------- #

def equivariant_mlp_pallas(equis, invs, params, original=False, tile_rows=None,
                           out_dtype=jnp.float32, vmem_budget_bytes=24 << 20):
    B, N, three, E = equis.shape
    assert three == 3
    d_inv = invs.shape[-1]
    R = B * N

    prep = prepare_params(params, d_inv, original)

    # free, contiguous views of the natural layout -- no HBM transposes / pads
    eq2 = equis.reshape(R, 3 * E)
    inv2 = invs.reshape(R, d_inv)

    eq_b = eq2.dtype.itemsize
    out_b = np.dtype(out_dtype).itemsize
    inv_b = inv2.dtype.itemsize
    # double-buffered eq-in + out + inv blocks, lane-padded to the vreg width
    per_row = 2 * (_round_up(3 * E, 128) * (eq_b + out_b)
                   + _round_up(d_inv, 128) * inv_b)

    if tile_rows is None:
        tn = (vmem_budget_bytes // per_row) // 8 * 8
        tn = max(8, min(1024, tn))
        tn = min(tn, _round_up(R, 8))
        if R > 8:                                   # >= 2 tiles feeds both v7x TCs
            tn = min(tn, _round_up(pl.cdiv(R, 2), 8))
    else:
        tn = max(8, _round_up(tile_rows, 8))

    n_tiles = pl.cdiv(R, tn)
    if n_tiles > 1 and n_tiles % 2 == 1:            # keep tile count even for v7x
        cand = _round_up(pl.cdiv(R, n_tiles + 1), 8)
        if cand >= 8 and pl.cdiv(R, cand) % 2 == 0:
            tn = cand
            n_tiles = pl.cdiv(R, tn)

    if original:
        weights = [prep["w1"], prep["b1"], prep["w2a"], prep["b2a"], prep["wcs"]]
        kernel = _emlp_original_kernel
    else:
        weights = [prep["w1i"], prep["w1l"], prep["b1"], prep["w2"], prep["b2"],
                   prep["wc"], prep["wa"]]
        kernel = _emlp_gated_kernel

    weight_bytes = sum(int(w.size) * w.dtype.itemsize for w in weights)
    vmem_limit = int(min(48 << 20,                  # safe on v7x's 64 MiB physical
                         max(16 << 20, per_row * tn + weight_bytes + (8 << 20))))

    eq_spec = pl.BlockSpec((tn, 3 * E), lambda t: (t, 0))
    inv_spec = pl.BlockSpec((tn, d_inv), lambda t: (t, 0))
    out_spec = pl.BlockSpec((tn, 3 * E), lambda t: (t, 0))
    w_specs = [pl.BlockSpec(tuple(w.shape), lambda t, _nd=w.ndim: (0,) * _nd)
               for w in weights]

    out = pl.pallas_call(
        kernel,
        grid=(n_tiles,),
        in_specs=[eq_spec, inv_spec] + w_specs,
        out_specs=out_spec,
        out_shape=jax.ShapeDtypeStruct((R, 3 * E), out_dtype),
        compiler_params=pltpu.CompilerParams(
            dimension_semantics=("parallel",),
            vmem_limit_bytes=vmem_limit),
    )(eq2, inv2, *weights)

    return out.reshape(B, N, 3, E)                  # free view back to [B, N, 3, E]


# ------------------------------- references --------------------------------- #

def mirror_forward(equis, invs, prep, original):
    """bf16-matmul mirror of the kernel's exact algorithm (tight numerical check)."""
    B, N, _, E = equis.shape
    R = B * N
    eq = equis.reshape(R, 3, E).astype(jnp.float32)
    inv2 = invs.reshape(R, -1)
    if original:
        h = _dot_bf(inv2, prep["w1"]) + prep["b1"]
        h = h * _sigmoid(h)
        ga = _dot_bf(h, prep["w2a"]) + prep["b2a"]
        s = jnp.sum(eq * prep["wcs"][None, :, :], axis=-1, keepdims=True)  # [R,3,1]
        out = s * ga[:, None, :]
    else:
        lengths = jnp.sqrt(jnp.sum(eq * eq, axis=1))                       # [R, E]
        h = _dot_bf(inv2, prep["w1i"]) + _dot_bf(lengths, prep["w1l"]) + prep["b1"]
        h = h * _sigmoid(h)
        gate = _sigmoid(_dot_bf(h, prep["w2"]) + prep["b2"])
        proj = _dot_bf(eq.reshape(R * 3, E), prep["wc"]).reshape(R, 3, E)
        gated = proj.astype(jnp.bfloat16) * gate[:, None, :].astype(jnp.bfloat16)
        out = jnp.dot(gated.reshape(R * 3, E), prep["wa"],
                      preferred_element_type=jnp.float32).reshape(R, 3, E)
    return out.reshape(B, N, 3, E)


def reference_forward(equis, invs, p, original):
    """Faithful f32 mirror of the PyTorch module (loose semantic check)."""
    hp = jax.lax.Precision.HIGHEST
    equis = equis.astype(jnp.float32)
    if original:
        h = jax.nn.silu(jnp.einsum("bnd,de->bne", invs, p["w1"], precision=hp) + p["b1"])
        inv_feats = jnp.einsum("bne,ef->bnf", h, p["w2"], precision=hp) + p["b2"]
        proj = jnp.einsum("bnce,ef->bncf", equis, p["wc"], precision=hp)
        att = inv_feats[:, :, None, :, None] * proj[:, :, :, None, :]
        gated = att.sum(-1)
    else:
        lengths = jnp.sqrt(jnp.sum(equis * equis, axis=2))
        x = jnp.concatenate([invs, lengths], axis=-1)
        h = jax.nn.silu(jnp.einsum("bnd,de->bne", x, p["w1"], precision=hp) + p["b1"])
        gate = jax.nn.sigmoid(jnp.einsum("bne,ef->bnf", h, p["w2"], precision=hp) + p["b2"])
        proj = jnp.einsum("bnce,ef->bncf", equis, p["wc"], precision=hp)
        gated = proj * gate[:, :, None, :]
    return jnp.einsum("bnce,ef->bncf", gated, p["wa"], precision=hp)


def init_params(key, d_equi, d_inv, original):
    keys = iter(jax.random.split(key, 16))

    def linear(din, dout, bias=True):
        s = 1.0 / (din ** 0.5)
        w = jax.random.uniform(next(keys), (din, dout), jnp.float32, -s, s)
        b = jax.random.uniform(next(keys), (1, dout), jnp.float32, -s, s) if bias else None
        return w, b

    d_in1 = d_inv if original else d_inv + d_equi
    w1, b1 = linear(d_in1, d_equi)
    w2, b2 = linear(d_equi, d_equi)
    wc, _ = linear(d_equi, d_equi, bias=False)
    wa, _ = linear(d_equi, d_equi, bias=False)
    return dict(w1=w1, b1=b1, w2=w2, b2=b2, wc=wc, wa=wa)


if __name__ == "__main__":
    key = jax.random.PRNGKey(0)
    configs = [
        dict(B=2, N=16, d_equi=16, d_inv=32),     # small / lane-sparse E
        dict(B=2, N=16, d_equi=128, d_inv=64),    # lane-dense: output last dim = 384
    ]
    for ci, cfg in enumerate(configs):
        B, N, d_equi, d_inv = cfg["B"], cfg["N"], cfg["d_equi"], cfg["d_inv"]
        k_eq, k_inv, k_p0, k_p1 = jax.random.split(jax.random.fold_in(key, ci), 4)
        equis = jax.random.normal(k_eq, (B, N, 3, d_equi), jnp.float32)
        invs = jax.random.normal(k_inv, (B, N, d_inv), jnp.float32)

        originals = (False, True) if ci == 0 else (False,)
        for original, k_p in zip(originals, (k_p0, k_p1)):
            params = init_params(k_p, d_equi, d_inv, original)
            prep = prepare_params(params, d_inv, original)

            out = equivariant_mlp_pallas(equis, invs, params, original=original)
            out = jax.block_until_ready(out)
            assert out.shape == (B, N, 3, d_equi)
            assert bool(jnp.all(jnp.isfinite(out)))

            mirror = mirror_forward(equis, invs, prep, original)
            assert bool(jnp.allclose(out, mirror, rtol=2e-3, atol=2e-3)), \
                f"mirror mismatch (cfg={ci}, original={original})"

            ref = reference_forward(equis, invs, params, original)
            # bf16 matmul operands -> expect <~1% deviation from full f32
            assert bool(jnp.allclose(out, ref, rtol=5e-2, atol=5e-2)), \
                f"reference mismatch (cfg={ci}, original={original})"

            # bf16 activation I/O path (halves the dominant HBM streams)
            if ci == 0 and not original:
                eq_bf = equis.astype(jnp.bfloat16)
                out_bf = jax.block_until_ready(
                    equivariant_mlp_pallas(eq_bf, invs, params, original=False))
                mirror_bf = mirror_forward(eq_bf, invs, prep, False)
                assert bool(jnp.allclose(out_bf, mirror_bf, rtol=2e-3, atol=2e-3)), \
                    "bf16-I/O mirror mismatch"
                assert bool(jnp.allclose(out_bf, ref, rtol=5e-2, atol=5e-2)), \
                    "bf16-I/O reference mismatch"

    print("KERNEL_OK")
</pallas_src>

<mosaic_0001>
module attributes {stable_mosaic.version = 11 : i64} {
  func.func @_emlp_gated_kernel(%arg0: i32, %arg1: memref<16x48xf32, #tpu.memory_space<vmem>>, %arg2: memref<16x32xf32, #tpu.memory_space<vmem>>, %arg3: memref<32x16xbf16, #tpu.memory_space<vmem>>, %arg4: memref<16x16xbf16, #tpu.memory_space<vmem>>, %arg5: memref<1x16xf32, #tpu.memory_space<vmem>>, %arg6: memref<16x16xbf16, #tpu.memory_space<vmem>>, %arg7: memref<1x16xf32, #tpu.memory_space<vmem>>, %arg8: memref<16x16xbf16, #tpu.memory_space<vmem>>, %arg9: memref<16x16xbf16, #tpu.memory_space<vmem>>, %arg10: memref<16x48xf32, #tpu.memory_space<vmem>>) attributes {dimension_semantics = [#tpu.dimension_semantics<parallel>], iteration_bounds = array<i64: 2>, scalar_prefetch = 0 : i64, scratch_operands = 0 : i64, tpu.core_type = #tpu.core_type<tc>, window_params = [{transform_indices = @transform_0, window_bounds = array<i64: 16, 48>}, {transform_indices = @transform_1, window_bounds = array<i64: 16, 32>}, {pipeline_mode = #tpu.pipeline_mode<synchronous>, transform_indices = @transform_2, window_bounds = array<i64: 32, 16>}, {pipeline_mode = #tpu.pipeline_mode<synchronous>, transform_indices = @transform_3, window_bounds = array<i64: 16, 16>}, {pipeline_mode = #tpu.pipeline_mode<synchronous>, transform_indices = @transform_4, window_bounds = array<i64: 1, 16>}, {pipeline_mode = #tpu.pipeline_mode<synchronous>, transform_indices = @transform_5, window_bounds = array<i64: 16, 16>}, {pipeline_mode = #tpu.pipeline_mode<synchronous>, transform_indices = @transform_6, window_bounds = array<i64: 1, 16>}, {pipeline_mode = #tpu.pipeline_mode<synchronous>, transform_indices = @transform_7, window_bounds = array<i64: 16, 16>}, {pipeline_mode = #tpu.pipeline_mode<synchronous>, transform_indices = @transform_8, window_bounds = array<i64: 16, 16>}, {transform_indices = @transform_9, window_bounds = array<i64: 16, 48>}]} {
    %c0 = arith.constant 0 : index
    %c0_0 = arith.constant 0 : index
    %0 = vector.load %arg1[%c0, %c0_0] : memref<16x48xf32, #tpu.memory_space<vmem>>, vector<16x48xf32>
    %1 = vector.extract_strided_slice %0 {offsets = [0, 0], sizes = [16, 16], strides = [1, 1]} : vector<16x48xf32> to vector<16x16xf32>
    %2 = vector.extract_strided_slice %0 {offsets = [0, 16], sizes = [16, 16], strides = [1, 1]} : vector<16x48xf32> to vector<16x16xf32>
    %3 = vector.extract_strided_slice %0 {offsets = [0, 32], sizes = [16, 16], strides = [1, 1]} : vector<16x48xf32> to vector<16x16xf32>
    %4 = arith.mulf %1, %1 : vector<16x16xf32>
    %5 = arith.mulf %2, %2 : vector<16x16xf32>
    %6 = arith.addf %4, %5 : vector<16x16xf32>
    %7 = arith.mulf %3, %3 : vector<16x16xf32>
    %8 = arith.addf %6, %7 : vector<16x16xf32>
    %9 = math.sqrt %8 : vector<16x16xf32>
    %c0_1 = arith.constant 0 : index
    %c0_2 = arith.constant 0 : index
    %10 = vector.load %arg2[%c0_1, %c0_2] : memref<16x32xf32, #tpu.memory_space<vmem>>, vector<16x32xf32>
    %c0_3 = arith.constant 0 : index
    %c0_4 = arith.constant 0 : index
    %11 = vector.load %arg3[%c0_3, %c0_4] : memref<32x16xbf16, #tpu.memory_space<vmem>>, vector<32x16xbf16>
    %12 = arith.truncf %10 : vector<16x32xf32> to vector<16x32xbf16>
    %cst = arith.constant dense<0.000000e+00> : vector<16x16xf32>
    %13 = tpu.matmul %12, %11, %cst {dimension_numbers = #tpu.dot_dimension_numbers<[1], [0], [0], [1], [0, 0, 1, 1], [], []>} : vector<16x32xbf16>, vector<32x16xbf16>, vector<16x16xf32> -> vector<16x16xf32>
    %c0_5 = arith.constant 0 : index
    %c0_6 = arith.constant 0 : index
    %14 = vector.load %arg4[%c0_5, %c0_6] : memref<16x16xbf16, #tpu.memory_space<vmem>>, vector<16x16xbf16>
    %15 = arith.truncf %9 : vector<16x16xf32> to vector<16x16xbf16>
    %cst_7 = arith.constant dense<0.000000e+00> : vector<16x16xf32>
    %16 = tpu.matmul %15, %14, %cst_7 {dimension_numbers = #tpu.dot_dimension_numbers<[1], [0], [0], [1], [0, 0, 1, 1], [], []>} : vector<16x16xbf16>, vector<16x16xbf16>, vector<16x16xf32> -> vector<16x16xf32>
    %17 = arith.addf %13, %16 : vector<16x16xf32>
    %c0_8 = arith.constant 0 : index
    %c0_9 = arith.constant 0 : index
    %18 = vector.load %arg5[%c0_8, %c0_9] : memref<1x16xf32, #tpu.memory_space<vmem>>, vector<1x16xf32>
    %19 = vector.broadcast %18 : vector<1x16xf32> to vector<16x16xf32>
    %20 = arith.addf %17, %19 : vector<16x16xf32>
    %cst_10 = arith.constant 0.000000e+00 : f32
    %21 = vector.broadcast %cst_10 : f32 to vector<16x16xf32>
    %22 = arith.subf %21, %20 : vector<16x16xf32>
    %23 = math.exp %22 : vector<16x16xf32>
    %cst_11 = arith.constant 1.000000e+00 : f32
    %24 = vector.broadcast %cst_11 : f32 to vector<16x16xf32>
    %25 = arith.addf %24, %23 : vector<16x16xf32>
    %cst_12 = arith.constant 1.000000e+00 : f32
    %26 = vector.broadcast %cst_12 : f32 to vector<16x16xf32>
    %27 = arith.divf %26, %25 : vector<16x16xf32>
    %28 = arith.mulf %20, %27 : vector<16x16xf32>
    %c0_13 = arith.constant 0 : index
    %c0_14 = arith.constant 0 : index
    %29 = vector.load %arg6[%c0_13, %c0_14] : memref<16x16xbf16, #tpu.memory_space<vmem>>, vector<16x16xbf16>
    %30 = arith.truncf %28 : vector<16x16xf32> to vector<16x16xbf16>
    %cst_15 = arith.constant dense<0.000000e+00> : vector<16x16xf32>
    %31 = tpu.matmul %30, %29, %cst_15 {dimension_numbers = #tpu.dot_dimension_numbers<[1], [0], [0], [1], [0, 0, 1, 1], [], []>} : vector<16x16xbf16>, vector<16x16xbf16>, vector<16x16xf32> -> vector<16x16xf32>
    %c0_16 = arith.constant 0 : index
    %c0_17 = arith.constant 0 : index
    %32 = vector.load %arg7[%c0_16, %c0_17] : memref<1x16xf32, #tpu.memory_space<vmem>>, vector<1x16xf32>
    %33 = vector.broadcast %32 : vector<1x16xf32> to vector<16x16xf32>
    %34 = arith.addf %31, %33 : vector<16x16xf32>
    %cst_18 = arith.constant 0.000000e+00 : f32
    %35 = vector.broadcast %cst_18 : f32 to vector<16x16xf32>
    %36 = arith.subf %35, %34 : vector<16x16xf32>
    %37 = math.exp %36 : vector<16x16xf32>
    %cst_19 = arith.constant 1.000000e+00 : f32
    %38 = vector.broadcast %cst_19 : f32 to vector<16x16xf32>
    %39 = arith.addf %38, %37 : vector<16x16xf32>
    %cst_20 = arith.constant 1.000000e+00 : f32
    %40 = vector.broadcast %cst_20 : f32 to vector<16x16xf32>
    %41 = arith.divf %40, %39 : vector<16x16xf32>
    %42 = arith.truncf %41 : vector<16x16xf32> to vector<16x16xbf16>
    %c0_21 = arith.constant 0 : index
    %c0_22 = arith.constant 0 : index
    %43 = vector.load %arg8[%c0_21, %c0_22] : memref<16x16xbf16, #tpu.memory_space<vmem>>, vector<16x16xbf16>
    %44 = arith.truncf %1 : vector<16x16xf32> to vector<16x16xbf16>
    %cst_23 = arith.constant dense<0.000000e+00> : vector<16x16xf32>
    %45 = tpu.matmul %44, %43, %cst_23 {dimension_numbers = #tpu.dot_dimension_numbers<[1], [0], [0], [1], [0, 0, 1, 1], [], []>} : vector<16x16xbf16>, vector<16x16xbf16>, vector<16x16xf32> -> vector<16x16xf32>
    %46 = arith.truncf %45 : vector<16x16xf32> to vector<16x16xbf16>
    %47 = arith.mulf %46, %42 : vector<16x16xbf16>
    %c0_24 = arith.constant 0 : index
    %c0_25 = arith.constant 0 : index
    %48 = vector.load %arg9[%c0_24, %c0_25] : memref<16x16xbf16, #tpu.memory_space<vmem>>, vector<16x16xbf16>
    %cst_26 = arith.constant dense<0.000000e+00> : vector<16x16xf32>
    %49 = tpu.matmul %47, %48, %cst_26 {dimension_numbers = #tpu.dot_dimension_numbers<[1], [0], [0], [1], [0, 0, 1, 1], [], []>} : vector<16x16xbf16>, vector<16x16xbf16>, vector<16x16xf32> -> vector<16x16xf32>
    %c0_27 = arith.constant 0 : index
    %c0_28 = arith.constant 0 : index
    %50 = vector.load %arg8[%c0_27, %c0_28] : memref<16x16xbf16, #tpu.memory_space<vmem>>, vector<16x16xbf16>
    %51 = arith.truncf %2 : vector<16x16xf32> to vector<16x16xbf16>
    %cst_29 = arith.constant dense<0.000000e+00> : vector<16x16xf32>
    %52 = tpu.matmul %51, %50, %cst_29 {dimension_numbers = #tpu.dot_dimension_numbers<[1], [0], [0], [1], [0, 0, 1, 1], [], []>} : vector<16x16xbf16>, vector<16x16xbf16>, vector<16x16xf32> -> vector<16x16xf32>
    %53 = arith.truncf %52 : vector<16x16xf32> to vector<16x16xbf16>
    %54 = arith.mulf %53, %42 : vector<16x16xbf16>
    %c0_30 = arith.constant 0 : index
    %c0_31 = arith.constant 0 : index
    %55 = vector.load %arg9[%c0_30, %c0_31] : memref<16x16xbf16, #tpu.memory_space<vmem>>, vector<16x16xbf16>
    %cst_32 = arith.constant dense<0.000000e+00> : vector<16x16xf32>
    %56 = tpu.matmul %54, %55, %cst_32 {dimension_numbers = #tpu.dot_dimension_numbers<[1], [0], [0], [1], [0, 0, 1, 1], [], []>} : vector<16x16xbf16>, vector<16x16xbf16>, vector<16x16xf32> -> vector<16x16xf32>
    %c0_33 = arith.constant 0 : index
    %c0_34 = arith.constant 0 : index
    %57 = vector.load %arg8[%c0_33, %c0_34] : memref<16x16xbf16, #tpu.memory_space<vmem>>, vector<16x16xbf16>
    %58 = arith.truncf %3 : vector<16x16xf32> to vector<16x16xbf16>
    %cst_35 = arith.constant dense<0.000000e+00> : vector<16x16xf32>
    %59 = tpu.matmul %58, %57, %cst_35 {dimension_numbers = #tpu.dot_dimension_numbers<[1], [0], [0], [1], [0, 0, 1, 1], [], []>} : vector<16x16xbf16>, vector<16x16xbf16>, vector<16x16xf32> -> vector<16x16xf32>
    %60 = arith.truncf %59 : vector<16x16xf32> to vector<16x16xbf16>
    %61 = arith.mulf %60, %42 : vector<16x16xbf16>
    %c0_36 = arith.constant 0 : index
    %c0_37 = arith.constant 0 : index
    %62 = vector.load %arg9[%c0_36, %c0_37] : memref<16x16xbf16, #tpu.memory_space<vmem>>, vector<16x16xbf16>
    %cst_38 = arith.constant dense<0.000000e+00> : vector<16x16xf32>
    %63 = tpu.matmul %61, %62, %cst_38 {dimension_numbers = #tpu.dot_dimension_numbers<[1], [0], [0], [1], [0, 0, 1, 1], [], []>} : vector<16x16xbf16>, vector<16x16xbf16>, vector<16x16xf32> -> vector<16x16xf32>
    %64 = tpu.concatenate %49, %56, %63 in 1 : vector<16x16xf32>, vector<16x16xf32>, vector<16x16xf32> -> vector<16x48xf32>
    %c0_39 = arith.constant 0 : index
    %c0_40 = arith.constant 0 : index
    %65 = vector.load %arg10[%c0_39, %c0_40] : memref<16x48xf32, #tpu.memory_space<vmem>>, vector<16x48xf32>
    tpu.vector_store %arg10[%c0_39, %c0_40], %64 {strides = array<i32>} : memref<16x48xf32, #tpu.memory_space<vmem>>, vector<16x48xf32>,
    return
  }
  func.func @transform_0(%arg0: i32) -> (i32, i32) {
    %c0_i32 = arith.constant 0 : i32
    %c0_i32_0 = arith.constant 0 : i32
    return %arg0, %c0_i32 : i32, i32
  }
  func.func @transform_1(%arg0: i32) -> (i32, i32) {
    %c0_i32 = arith.constant 0 : i32
    %c0_i32_0 = arith.constant 0 : i32
    return %arg0, %c0_i32 : i32, i32
  }
  func.func @transform_2(%arg0: i32) -> (i32, i32) {
    %c0_i32 = arith.constant 0 : i32
    %c0_i32_0 = arith.constant 0 : i32
    %c0_i32_1 = arith.constant 0 : i32
    return %c0_i32, %c0_i32_0 : i32, i32
  }
  func.func @transform_3(%arg0: i32) -> (i32, i32) {
    %c0_i32 = arith.constant 0 : i32
    %c0_i32_0 = arith.constant 0 : i32
    %c0_i32_1 = arith.constant 0 : i32
    return %c0_i32, %c0_i32_0 : i32, i32
  }
  func.func @transform_4(%arg0: i32) -> (i32, i32) {
    %c0_i32 = arith.constant 0 : i32
    %c0_i32_0 = arith.constant 0 : i32
    %c0_i32_1 = arith.constant 0 : i32
    return %c0_i32, %c0_i32_0 : i32, i32
  }
  func.func @transform_5(%arg0: i32) -> (i32, i32) {
    %c0_i32 = arith.constant 0 : i32
    %c0_i32_0 = arith.constant 0 : i32
    %c0_i32_1 = arith.constant 0 : i32
    return %c0_i32, %c0_i32_0 : i32, i32
  }
  func.func @transform_6(%arg0: i32) -> (i32, i32) {
    %c0_i32 = arith.constant 0 : i32
    %c0_i32_0 = arith.constant 0 : i32
    %c0_i32_1 = arith.constant 0 : i32
    return %c0_i32, %c0_i32_0 : i32, i32
  }
  func.func @transform_7(%arg0: i32) -> (i32, i32) {
    %c0_i32 = arith.constant 0 : i32
    %c0_i32_0 = arith.constant 0 : i32
    %c0_i32_1 = arith.constant 0 : i32
    return %c0_i32, %c0_i32_0 : i32, i32
  }
  func.func @transform_8(%arg0: i32) -> (i32, i32) {
    %c0_i32 = arith.constant 0 : i32
    %c0_i32_0 = arith.constant 0 : i32
    %c0_i32_1 = arith.constant 0 : i32
    return %c0_i32, %c0_i32_0 : i32, i32
  }
  func.func @transform_9(%arg0: i32) -> (i32, i32) {
    %c0_i32 = arith.constant 0 : i32
    %c0_i32_0 = arith.constant 0 : i32
    return %arg0, %c0_i32 : i32, i32
  }
}

</mosaic_0001>

<bundles_post_ra>
// kernel: tpu_custom_call.1
= control target key start
LH: loop header
LB: loop body
LE: loop exit
PB: predicated region body
PF: predicated region fallthrough
CT: control target
= control target key end

     0   :  { %s1758_s0 = inlined_call_operand.hbm [shape: f32[32,48], index: 0, kind: input, shape index: {}]   ;;  %s1759_s1 = inlined_call_operand.hbm [shape: f32[32,32], index: 1, kind: input, shape index: {}]   ;;  %s1760_s2 = inlined_call_operand.vmem [shape: bf16[32,16], index: 2, kind: input, shape index: {}]   ;;  %s1761_s3 = inlined_call_operand.vmem [shape: bf16[16,16], index: 3, kind: input, shape index: {}]   ;;  %s1762_s4 = inlined_call_operand.vmem [shape: f32[1,16], index: 4, kind: input, shape index: {}]   ;;  %s1763_s5 = inlined_call_operand.vmem [shape: bf16[16,16], index: 5, kind: input, shape index: {}]   ;;  %s1764_s6 = inlined_call_operand.vmem [shape: f32[1,16], index: 6, kind: input, shape index: {}]   ;;  %s1765_s7 = inlined_call_operand.vmem [shape: bf16[16,16], index: 7, kind: input, shape index: {}]   ;;  %s1766_s8 = inlined_call_operand.vmem [shape: bf16[16,16], index: 8, kind: input, shape index: {}]   ;;  %s1767_s9 = inlined_call_operand.hbm [shape: f32[32,48], index: 9, kind: output, shape index: {}]  }
   0x1   :  { %1776 = sst [smem:[#allocation14_spill]] %s1758_s0 }
   0x2   :  { %14 = vsyncpa [#allocation3], 0 }
   0x3   :  { %16 = vsyncpa [#allocation3 + $0x1], 0 }
   0x4   :  { %17 = vsyncpa [#allocation6], 0 }
   0x5   :  { %19 = vsyncpa [#allocation6 + $0x1], 0 }
   0x6   :  { %20 = vsyncpa [#allocation4], 0 }
   0x7   :  { %22 = vsyncpa [#allocation4 + $0x1], 0  ;;  %s1465_s30 = smov 0   ;;  %s1467_s10 = smov 0  }
   0x8   :  { %s1469_s11 = smov 0   ;;  %s1471_s12 = smov 0  }
   0x9 LB: > { %1777 = sst [smem:[#allocation11_spill]] %s1396_s11  ;;  %s1486_s13 = sadd.s32 4294967295, %s1400_s12   ;;  %s1400_s12 = sphi %s1471_s12, %s1795_s12   ;;  %s1396_s11 = sphi %s1469_s11, %s1797_s11   ;;  %s1392_s10 = sphi %s1467_s10, %s1799_s10   ;;  %s1388_s30 = sphi %s1465_s30, %s1798_s30  }
   0xa   : > { %s1070_s14 = sadd.s32 4294967294, %s1400_s12   ;;  %s1490_s15 = sadd.s32 1, %s1400_s12  }
   0xb   : > { %1778 = sst [smem:[#allocation12_spill]] %s1490_s15  ;;  %s35_s16 = sadd.s32 1, %s1396_s11 }
   0xc   : > { %s32_s17 = ssub.s32 %s1400_s12, %s1490_s15  ;;  %p42_p0 = scmp.ne.s32.totalorder %s1396_s11, %s1392_s10 }
   0xd   : > { %p33_p1 = scmp.eq.s32.totalorder %s32_s17, 0  ;;  %p43_p2 = scmp.eq.s32.totalorder %s1400_s12, 0 }
   0xe   : > { %p48_p3 = scmp.ne.s32.totalorder %s1392_s10, %s1388_s30  ;;  %p49_p4 = scmp.eq.s32.totalorder %s1486_s13, 0 }
   0xf   : > { %s1502_s18 = scalar_select %p33_p1, %s1396_s11, %s35_s16  }
  0x10   : > { %p1504_p5 = por %p43_p2, %p42_p0  ;;  %p1508_p6 = por %p49_p4, %p48_p3 }
  0x11   : > { %1779 = sst [smem:[#allocation13_spill]] %s1502_s18  ;;  %p245_p7 = scmp.eq.s32.totalorder %s1486_s13, 1 }
  0x12   : > { %s1781_s20 = scalar_select %p1508_p6, 1, 0 }
  0x13   : > { %p251_p8 = scmp.eq.s32.totalorder %s1070_s14, 1  ;;  %p1200_p10 = scmp.lt.s32.totalorder %s1400_s12, 2 }
  0x14   : > { %p1515_p11 = por %p245_p7, %p42_p0  ;;  %s1524_s23 = sand.u32 1, %s1396_s11  }
  0x15   : > { %p1519_p12 = por %p251_p8, %p48_p3  ;;  %s1769_s24 = sshll.u32 %s1400_s12, 8 }
  0x16   : > { %s1782_s21 = scalar_select %p1515_p11, 1, 0 }
  0x17   : > { %s1783_s22 = scalar_select %p1519_p12, 1, 0 }
  0x18   : > { %s1768_s25 = sshll.u32 %s1524_s23, 4  ;;  %s1784_s0 = sld [smem:[#allocation14_spill]] }
  0x19   : > { %s296_s29 = scalar_lea.vmem [#allocation2], %s1768_s25  ;;  %p1539_p13 = pnand %p1200_p10, %p1504_p5 }
  0x1a   : > { %s303_s14 = sshll.u32 %s296_s29, 4  ;;  %s1543_s14 = int_to_ptr.vmem [resolvable:$true] %s303_s14 }
  0x1b   : > { %p1272_p1 = pneg %p1539_p13 }
  0x1e   : > { %s1533_s28 = scalar_lea.hbm %s1784_s0, %s1769_s24  ;;  %s1275_s19 = scalar_lea.hbm %s1784_s0, 512 }
  0x1f   : > { %s1270_s26 = scalar_lea.hbm %s1533_s28, 256  ;;  %p1276_p4 = scmp.lt.u32.totalorder %s1533_s28, %s1784_s0 }
  0x20   : > { %p1271_p0 = scmp.ne.s32.totalorder %s1533_s28, %s1270_s26  ;;  %p1277_p5 = scmp.lt.u32.totalorder %s1275_s19, %s1270_s26 }
  0x21   : > { %p1279_p8 = scmp.lt.u32.totalorder %s1270_s26, %s1533_s28 }
  0x22   : > { %p1273_p2 = pnand %p1272_p1, %p1271_p0  ;;  %p1278_p7 = por %p1277_p5, %p1276_p4 }
  0x24   : > { %p1274_p3 = pneg %p1273_p2  ;;  %p1280_p10 = por %p1279_p8, %p1278_p7 }
  0x26   : > { %p1281_p9 = pnand %p1280_p10, %p1274_p3 }
  0x28   : > { %1284 = shalt.err (!%p1281_p9)
}
  0x29   : > { %s1285_s17 = scalar_lea.vmem %s1543_s14, 256  ;;  %s1402_s27 = smov [#allocation2]  }
  0x2a   : > { %p1286_p0 = scmp.ne.s32.totalorder %s1543_s14, %s1285_s17  ;;  %s1290_s29 = sshll.u32 %s1402_s27, 4  ;;  %s1291_s29 = int_to_ptr.vmem [resolvable:$false] %s1290_s29 }
  0x2b   : > { %s1292_s24 = scalar_lea.vmem %s1291_s29, 512  ;;  %p1293_p11 = scmp.lt.s32.totalorder %s1543_s14, %s1291_s29 }
  0x2c   : > { %p1288_p2 = pnand %p1286_p0, %p1272_p1  ;;  %p1294_p4 = scmp.lt.s32.totalorder %s1292_s24, %s1285_s17 }
  0x2e   : > { %p1289_p12 = pneg %p1288_p2  ;;  %p1295_p5 = por %p1294_p4, %p1293_p11 }
  0x30   : > { %p1296_p7 = pnand %p1295_p5, %p1289_p12 }
  0x32   : > { %1299 = shalt.err (!%p1296_p7)
}
  0x33   : > { %s1774_s25 = smov 128   ;;  %s1404_s26 = smov 8  }
  0x34   : > { %s1786_s17 = scalar_lea.sflag [#allocation3], %s1524_s23  ;;  %p1079_p9 = scmp.ge.s32.totalorder %s1400_s12, 1 }
  0x35   : > { %1192 = dma.hbm_to_vmem [thread:$0]  (!%p1539_p13), %s1533_s28, 256, %s1543_s14, %s1786_s17, %s1774_s25, %s1774_s25, %s1404_s26  }
  0x36   : > { %p332_p11 = scmp.lt.s32.totalorder %s1400_s12, 3  ;;  %s1788_s27 = sshll.u32 %s1400_s12, 8 }
  0x37   : > { %s1587_s0 = scalar_lea.hbm %s1759_s1, %s1788_s27  ;;  %s1789_s18 = sshll.u32 %s1524_s23, 4 }
  0x38   : > { %p1578_p12 = pnand %p1079_p9, %p332_p11  ;;  %s317_s11 = scalar_lea.vmem [#allocation5], %s1789_s18 }
  0x39   : > { %s324_s15 = sshll.u32 %s317_s11, 4  ;;  %s314_s28 = scalar_lea.sflag [#allocation6], %s1524_s23  ;;  %s1591_s15 = int_to_ptr.vmem [resolvable:$true] %s324_s15 }
  0x3a   : > { %s1300_s14 = scalar_lea.hbm %s1587_s0, 256  ;;  %s1305_s27 = scalar_lea.hbm %s1759_s1, 512 }
  0x3b   : > { %p1301_p3 = scmp.ne.s32.totalorder %s1587_s0, %s1300_s14  ;;  %p1306_p0 = scmp.lt.u32.totalorder %s1587_s0, %s1759_s1 }
  0x3c   : > { %p1307_p2 = scmp.lt.u32.totalorder %s1305_s27, %s1300_s14  ;;  %p1309_p5 = scmp.lt.u32.totalorder %s1300_s14, %s1587_s0 }
  0x3d   : > { %p1303_p8 = pnand %p1301_p3, %p1272_p1 }
  0x3e   : > { %p1308_p4 = por %p1307_p2, %p1306_p0 }
  0x3f   : > { %p1304_p10 = pneg %p1303_p8 }
  0x40   : > { %p1310_p7 = por %p1309_p5, %p1308_p4 }
  0x42   : > { %p1311_p9 = pnand %p1310_p7, %p1304_p10 }
  0x44   : > { %1314 = shalt.err (!%p1311_p9)
}
  0x45   : > { %s1315_s11 = scalar_lea.vmem %s1591_s15, 256  ;;  %s1405_s18 = smov [#allocation5]  }
  0x46   : > { %p1316_p11 = scmp.ne.s32.totalorder %s1591_s15, %s1315_s11  ;;  %s1320_s17 = sshll.u32 %s1405_s18, 4  ;;  %s1321_s17 = int_to_ptr.vmem [resolvable:$false] %s1320_s17 }
  0x47   : > { %s1322_s25 = scalar_lea.vmem %s1321_s17, 512  ;;  %p1323_p6 = scmp.lt.s32.totalorder %s1591_s15, %s1321_s17 }
  0x48   : > { %p1318_p3 = pnand %p1316_p11, %p1272_p1  ;;  %p1324_p0 = scmp.lt.s32.totalorder %s1322_s25, %s1315_s11 }
  0x4a   : > { %p1319_p8 = pneg %p1318_p3  ;;  %p1325_p2 = por %p1324_p0, %p1323_p6 }
  0x4c   : > { %p1326_p4 = pnand %p1325_p2, %p1319_p8 }
  0x4e   : > { %1329 = shalt.err (!%p1326_p4)
}
  0x4f   : > { %s1790_s14 = smov 128   ;;  %336 = sbr.rel (%p1578_p12) target bundleno = 1091 (0x443), region = 56 }
  0x50   : > { %1195 = dma.hbm_to_vmem [thread:$0]  (!%p1539_p13), %s1587_s0, 256, %s1591_s15, %s314_s28, %s1790_s14, %s1790_s14, %s1404_s26  }
  0x51   : > { %s1625_s29 = sand.u32 (!%p1578_p12), 1, %s1392_s10   ;;  %p1791_p6 = scmp.ne.s32.totalorder (!%p1578_p12), %s1781_s20, 0 }
  0x52   : > { %s1628_s27 = sshll.u32 (!%p1578_p12), %s1625_s29, 4  ;;  %s339_s16 = scalar_lea.sflag (!%p1578_p12), [#allocation3], %s1625_s29 }
  0x53   : > { %s342_s24 = scalar_lea.vmem (!%p1578_p12), [#allocation2], %s1628_s27 }
  0x56   : > { %1375 = dma.done.wait (%p1791_p6), %s339_s16, 256  }
  0x57   : > { %1377 = vsyncadd (%p1791_p6), %s339_s16, 4294967040  ;;  %s348_s0 = scalar_lea.sflag [#allocation6], %s1625_s29  ;;  %s351_s15 = scalar_lea.vmem [#allocation5], %s1628_s27 }
  0x58   : > { %1379 = dma.done.wait (%p1791_p6), %s348_s0, 256  }
  0x59   : > { %1381 = vsyncadd (%p1791_p6), %s348_s0, 4294967040  ;;  %v1406_v0 = vmov 0.0   ;;  %v395_v1 = vld [vmem:[%s342_s24] sm:$0xff]  ;;  %v396_v2 = vld [vmem:[%s342_s24 + $0x8] sm:$0xff]  ;;  %vm1407_vm0 = vmmov 0   ;;  %s1408_s28 = smov 112  }
  0x5a   : > { %1133 = vmatprep.subr.bf16.mxu1 %v1406_v0  ;;  %1127 = vmatprep.subr.bf16.mxu0 %v1406_v0  ;;  %v397_v3 = vmul.f32 %v395_v1, %v395_v1  ;;  %v1244_v4 = vld [vmem:[%s1760_s2] sm:$0xff]   ;;  %v1245_v5 = vld [vmem:[%s1760_s2 + $0x8] sm:$0xff]   ;;  %s1409_s11 = smov 96   ;;  %v398_v6 = vmul.f32 %v396_v2, %v396_v2  ;;  %vm504_vm1 = vcmask 261120   ;;  %v647_v11 = vpack.c.bf16 %v396_v2, %v395_v1  ;;  %s390_s18 = scalar_lea.vmem [#allocation7], %s1628_s27 }
  0x5b   : > { %1137 = vmatprep.mubr.msk.bf16.mxu1 %vm1407_vm0, %v1406_v0  ;;  %1129 = vmatprep.mubr.msk.bf16.mxu0 %vm1407_vm0, %v1406_v0  ;;  %v1246_v7 = vld [vmem:[%s1761_s3] sm:$0xff]   ;;  %v432_v9 = vld [vmem:[%s351_s15 + $0x8] sm:$0xff]  ;;  %vm447_vm6 = vcmask 130048   ;;  %s974_s17 = sshll.u32 %s390_s18, 4  ;;  %s1107_s25 = sshll.u32 %s1486_s13, 8  ;;  %vm957_vm7 = vcmask 392192   ;;  %s1706_s17 = int_to_ptr.vmem [resolvable:$true] %s974_s17 }
  0x5c   : > { %401 = vrot.lane.b32.xlu0 %v397_v3, %s1408_s28  ;;  %409 = vrot.lane.b32.xlu1 %v397_v3, %s1409_s11  ;;  %v431_v8 = vld [vmem:[%s351_s15] sm:$0xff]  ;;  %s1712_s24 = scalar_lea.hbm %s1767_s9, %s1107_s25  ;;  %s961_s13 = scalar_lea.sflag [#allocation4], %s1625_s29 }
  0x5d   : > { %1134 = vmatpush3.bf16.msra.mxu1 %v1244_v4  ;;  %1128 = vmatpush3.bf16.msra.mxu0 %v1246_v7  ;;  %v437_v10 = vpack.c.bf16 %v432_v9, %v431_v8  ;;  %v1247_v35 = vld [vmem:[%s1763_s5] sm:$0xff]   ;;  %s1330_s27 = scalar_lea.vmem %s1706_s17, 256  ;;  %p1792_p1 = scmp.ne.s32.totalorder %s1782_s21, 0 }
  0x5e   : > { %1135 = vmatprep.subr.bf16.mxu1 %v1406_v0  ;;  %1141 = vmatprep.subr.bf16.mxu0 %v1406_v0  ;;  %v1248_v36 = vld [vmem:[%s1765_s7] sm:$0xff]   ;;  %p1331_p13 = scmp.ne.s32.totalorder %s1706_s17, %s1330_s27  ;;  %s1412_s0 = smov [#allocation7]  }
  0x5f   : > { %v1088_v40 = vld [vmem:[%s1762_s4] ss:$0 sm:$0xff]  ;;  %s1334_s15 = sshll.u32 %s1412_s0, 4  ;;  %s1335_s15 = int_to_ptr.vmem [resolvable:$false] %s1334_s15 }
  0x60   : > { %403 = vrot.lane.b32.xlu0 %v398_v6, %s1408_s28  ;;  %411 = vrot.lane.b32.xlu1 %v398_v6, %s1409_s11  ;;  %v1249_v9 = vld [vmem:[%s1766_s8] sm:$0xff]   ;;  %p1332_p12 = pnand %p1331_p13, %p1792_p1  ;;  %s1336_s23 = scalar_lea.vmem %s1335_s15, 512 }
  0x61   : > { %1136 = vmatpush3.bf16.msra.mxu1 %v1245_v5  ;;  %p1337_p5 = scmp.lt.s32.totalorder %s1706_s17, %s1335_s15  ;;  %p1338_p7 = scmp.lt.s32.totalorder %s1336_s23, %s1330_s27 }
  0x62   : > { %1147 = vmatprep.subr.bf16.mxu1 %v1406_v0  ;;  %p1333_p10 = pneg %p1332_p12 }
  0x63   : > { %p1339_p9 = por %p1338_p7, %p1337_p5 }
  0x64   : > { %1138 = vmatmul.mubr.msk.bf16.vlgmr.msra.gmra.mrb[0].mxu1 %vm504_vm1, %v437_v10  ;;  %753 = vrot.lane.b32.xlu0 %v647_v11, %s1408_s28  ;;  %s1410_s28 = smov 16  }
  0x65   : > { %1149 = vmatprep.mubr.msk.bf16.mxu1 %vm1407_vm0, %v1406_v0  ;;  %845 = vrot.lane.b32.xlu1 %v647_v11, %s1409_s11  ;;  %s1411_s11 = smov 32   ;;  %p1340_p11 = pnand %p1339_p9, %p1333_p10 }
  0x66   : > { %1148 = vmatpush3.bf16.msra.mxu1 %v1248_v36 }
  0x67   : > { %1159 = vmatprep.subr.bf16.mxu1 %v1406_v0 }
  0x6c   : > { %1150 = vmatmul.mubr.msk.bf16.vlgmr.msra.gmra.mrb[4].mxu1 %vm447_vm6, %v647_v11 }
  0x6d   : > { %1160 = vmatpush3.bf16.msra.mxu1 %v1248_v36  ;;  %1161 = vmatprep.mubr.msk.bf16.mxu1 %vm1407_vm0, %v1406_v0 }
  0x6e   : > { %1171 = vmatprep.subr.bf16.mxu1 %v1406_v0 }
  0xce   : > { %v402_v12 = vpop.permute.xlu0 %401  ;;  %v410_v13 = vpop.permute.xlu1 %409 }
  0xcf   : > { %v407_v14 = vadd.f32 %v402_v12, %v397_v3 }
  0xd1   : > { %v415_v15 = vadd.f32 %v410_v13, %v407_v14  ;;  %v1089_v14 = vld [vmem:[%s1764_s6] ss:$0 sm:$0xff] }
  0xd2   : > { %v404_v16 = vpop.permute.xlu0 %403  ;;  %v412_v17 = vpop.permute.xlu1 %411 }
  0xd3   : > { %1250 = vrsqrt.f32 %v415_v15  ;;  %v408_v18 = vadd.f32 %v404_v16, %v398_v6  ;;  %vm419_vm2 = vcmp.eq.f32.partialorder %v415_v15, inf  ;;  %v422_v25 = vand.u32 2147483648, %v415_v15 }
  0xd4   : > { %vm421_vm4 = vcmp.eq.f32.partialorder %v415_v15, 0.0 }
  0xd5   : > { %v416_v19 = vadd.f32 %v412_v17, %v408_v18 }
  0xd6   : > { %v754_v37 = vpop.permute.xlu0 %753 }
  0xd7   : > { %1252 = vrsqrt.f32 %v416_v19  ;;  %vm426_vm3 = vcmp.eq.f32.partialorder %v416_v19, inf  ;;  %v429_v26 = vand.u32 2147483648, %v416_v19  ;;  %vm428_vm5 = vcmp.eq.f32.partialorder %v416_v19, 0.0  ;;  %1162 = vmatmul.mubr.msk.bf16.vlgmr.msra.gmra.mrb[8].mxu1 %vm447_vm6, %v754_v37  ;;  %v846_v38 = vpop.permute.xlu1 %845 }
  0xd8   : > { %1172 = vmatpush3.bf16.msra.mxu1 %v1248_v36  ;;  %1173 = vmatprep.mubr.msk.bf16.mxu1 %vm1407_vm0, %v1406_v0 }
  0xdd   : > { %v1251_v20 = vpop.eup %1250 }
  0xde   : > { %v418_v21 = vmul.f32 %v1251_v20, %v415_v15 }
  0xdf   : > { %1174 = vmatmul.mubr.msk.bf16.vlgmr.msra.gmra.mrb[12].mxu1 %vm447_vm6, %v846_v38 }
  0xe0   : > { %v420_v23 = vsel %vm419_vm2, %v415_v15, %v418_v21 }
  0xe1   : > { %v1253_v22 = vpop.eup %1252  ;;  %v423_v28 = vsel %vm421_vm4, %v422_v25, %v420_v23 }
  0xe2   : > { %v425_v24 = vmul.f32 %v1253_v22, %v416_v19 }
  0xe4   : > { %v427_v27 = vsel %vm426_vm3, %v416_v19, %v425_v24 }
  0xe5   : > { %v430_v29 = vsel %vm428_vm5, %v429_v26, %v427_v27 }
  0xe6   : > { %v440_v30 = vpack.c.bf16 %v430_v29, %v423_v28 }
  0xe8   : > { %1130 = vmatmul.mubr.msk.bf16.vlgmr.msra.gmra.mrb[0].mxu0 %vm447_vm6, %v440_v30 }
  0xe9   : > { %1143 = vmatprep.mubr.msk.bf16.mxu0 %vm1407_vm0, %v1406_v0  ;;  %1142 = vmatpush3.bf16.msra.mxu0 %v1247_v35 }
  0xea   : > { %1153 = vmatprep.subr.bf16.mxu0 %v1406_v0 }
 0x137   : > { %v542_v31 = vpop.f32.mrb[0].mxu1 }
 0x138   : > { %v1139_v32 = vpop.f32.mrb[1].mxu1 }
 0x139   : > { %v545_v33 = vpop.f32.mrb[2].mxu1 }
 0x13a   : > { %v1140_v34 = vpop.f32.mrb[3].mxu1 }
 0x13f   : > { %v691_v61 = vpop.f32.mrb[4].mxu1 }
 0x140   : > { %v1151_v62 = vpop.f32.mrb[5].mxu1 }
 0x141   : > { %v694_v63 = vpop.f32.mrb[6].mxu1 }
 0x142   : > { %v1152_v1 = vpop.f32.mrb[7].mxu1  ;;  %v698_v7 = vpack.c.bf16 %v694_v63, %v691_v61 }
 0x1aa   : > { %v792_v2 = vpop.f32.mrb[8].mxu1 }
 0x1ab   : > { %v1163_v3 = vpop.f32.mrb[9].mxu1 }
 0x1ac   : > { %v795_v4 = vpop.f32.mrb[10].mxu1 }
 0x1ad   : > { %v1164_v5 = vpop.f32.mrb[11].mxu1  ;;  %v799_v11 = vpack.c.bf16 %v795_v4, %v792_v2 }
 0x1b2   : > { %v884_v6 = vpop.f32.mrb[12].mxu1 }
 0x1b3   : > { %v1175_v8 = vpop.f32.mrb[13].mxu1 }
 0x1b4   : > { %v887_v10 = vpop.f32.mrb[14].mxu1 }
 0x1b5   : > { %v891_v12 = vpack.c.bf16 %v887_v10, %v884_v6  ;;  %v1176_v13 = vpop.f32.mrb[15].mxu1 }
 0x1bb   : > { %v485_v39 = vpop.f32.mrb[0].mxu0 }
 0x1bc   : > { %v543_v41 = vadd.f32 %v542_v31, %v485_v39  ;;  %v1131_v42 = vpop.f32.mrb[1].mxu0 }
 0x1bd   : > { %v488_v43 = vpop.f32.mrb[2].mxu0 }
 0x1be   : > { %v556_v44 = vadd.f32 %v1088_v40, %v543_v41  ;;  %v546_v45 = vadd.f32 %v545_v33, %v488_v43  ;;  %v1132_v46 = vpop.f32.mrb[3].mxu0 }
 0x1c0   : > { %v558_v47 = vsub.f32 0.0, %v556_v44  ;;  %v557_v48 = vadd.f32 %v1088_v40, %v546_v45 }
 0x1c2   : > { %v560_v49 = vmul.f32 1.442695, %v558_v47  ;;  %v559_v50 = vsub.f32 0.0, %v557_v48 }
 0x1c4   : > { %1254 = vpow2.f32 %v560_v49  ;;  %v562_v51 = vmul.f32 1.442695, %v559_v50 }
 0x1c6   : > { %1256 = vpow2.f32 %v562_v51 }
 0x1ce   : > { %v1255_v52 = vpop.eup %1254 }
 0x1cf   : > { %v564_v53 = vadd.f32 1.0, %v1255_v52 }
 0x1d0   : > { %v1257_v54 = vpop.eup %1256 }
 0x1d1   : > { %1258 = vrcp.f32 %v564_v53  ;;  %v565_v55 = vadd.f32 1.0, %v1257_v54 }
 0x1d3   : > { %1260 = vrcp.f32 %v565_v55 }
 0x1db   : > { %v1259_v56 = vpop.eup %1258 }
 0x1dc   : > { %v570_v58 = vmul.f32 %v1259_v56, %v556_v44 }
 0x1dd   : > { %v1261_v57 = vpop.eup %1260 }
 0x1de   : > { %v571_v59 = vmul.f32 %v1261_v57, %v557_v48 }
 0x1e0   : > { %v574_v60 = vpack.c.bf16 %v571_v59, %v570_v58 }
 0x1e2   : > { %1144 = vmatmul.mubr.msk.bf16.vlgmr.msra.gmra.mrb[4].mxu0 %vm447_vm6, %v574_v60 }
 0x1e3   : > { %1155 = vmatprep.mubr.msk.bf16.mxu0 %vm1407_vm0, %v1406_v0  ;;  %1154 = vmatpush3.bf16.msra.mxu0 %v1249_v9 }
 0x1e4   : > { %1165 = vmatprep.subr.bf16.mxu0 %v1406_v0 }
 0x2b5   : > { %v625_v15 = vpop.f32.mrb[4].mxu0 }
 0x2b6   : > { %v626_v16 = vadd.f32 %v1089_v14, %v625_v15  ;;  %v1145_v17 = vpop.f32.mrb[5].mxu0 }
 0x2b7   : > { %v628_v18 = vpop.f32.mrb[6].mxu0 }
 0x2b8   : > { %v632_v19 = vsub.f32 0.0, %v626_v16  ;;  %v629_v20 = vadd.f32 %v1089_v14, %v628_v18  ;;  %v1146_v21 = vpop.f32.mrb[7].mxu0 }
 0x2ba   : > { %v634_v22 = vmul.f32 1.442695, %v632_v19  ;;  %v633_v23 = vsub.f32 0.0, %v629_v20 }
 0x2bc   : > { %1262 = vpow2.f32 %v634_v22  ;;  %v636_v24 = vmul.f32 1.442695, %v633_v23 }
 0x2be   : > { %1264 = vpow2.f32 %v636_v24 }
 0x2c6   : > { %v1263_v25 = vpop.eup %1262 }
 0x2c7   : > { %v638_v26 = vadd.f32 1.0, %v1263_v25 }
 0x2c8   : > { %v1265_v27 = vpop.eup %1264 }
 0x2c9   : > { %v639_v28 = vadd.f32 1.0, %v1265_v27  ;;  %1266 = vrcp.f32 %v638_v26 }
 0x2cb   : > { %1268 = vrcp.f32 %v639_v28 }
 0x2d3   : > { %v1267_v29 = vpop.eup %1266 }
 0x2d5   : > { %v1269_v30 = vpop.eup %1268 }
 0x2d6   : > { %v644_v31 = vpack.c.bf16 %v1269_v30, %v1267_v29 }
 0x2d8   : > { %v699_v32 = vmul.bf16 %v698_v7, %v644_v31  ;;  %v800_v33 = vmul.bf16 %v799_v11, %v644_v31  ;;  %v892_v34 = vmul.bf16 %v891_v12, %v644_v31 }
 0x2da   : > { %1156 = vmatmul.mubr.msk.bf16.vlgmr.msra.gmra.mrb[8].mxu0 %vm447_vm6, %v699_v32 }
 0x2db   : > { %1166 = vmatpush3.bf16.msra.mxu0 %v1249_v9  ;;  %1167 = vmatprep.mubr.msk.bf16.mxu0 %vm1407_vm0, %v1406_v0 }
 0x2dc   : > { %1177 = vmatprep.subr.bf16.mxu0 %v1406_v0 }
 0x2e2   : > { %1168 = vmatmul.mubr.msk.bf16.vlgmr.msra.gmra.mrb[12].mxu0 %vm447_vm6, %v800_v33 }
 0x2e3   : > { %1178 = vmatpush3.bf16.msra.mxu0 %v1249_v9  ;;  %1179 = vmatprep.mubr.msk.bf16.mxu0 %vm1407_vm0, %v1406_v0 }
 0x2ea   : > { %1180 = vmatmul.mubr.msk.bf16.vlgmr.msra.gmra.mrb[16].mxu0 %vm447_vm6, %v892_v34 }
 0x3ad   : > { %v745_v35 = vpop.f32.mrb[8].mxu0 }
 0x3ae   : > { %v1157_v36 = vpop.f32.mrb[9].mxu0 }
 0x3af   : > { %v748_v37 = vpop.f32.mrb[10].mxu0 }
 0x3b0   : > { %v1158_v38 = vpop.f32.mrb[11].mxu0 }
 0x3b5   : > { %v838_v39 = vpop.f32.mrb[12].mxu0 }
 0x3b6   : > { %939 = vrot.lane.b32.xlu0 %v838_v39, %s1410_s28  ;;  %v1169_v40 = vpop.f32.mrb[13].mxu0 }
 0x3b7   : > { %v841_v41 = vpop.f32.mrb[14].mxu0 }
 0x3b8   : > { %941 = vrot.lane.b32.xlu1 %v841_v41, %s1410_s28  ;;  %v1170_v42 = vpop.f32.mrb[15].mxu0 }
 0x3bd   : > { %v930_v43 = vpop.f32.mrb[16].mxu0 }
 0x3be   : > { %947 = vrot.lane.b32.xlu0 %v930_v43, %s1411_s11  ;;  %v1181_v44 = vpop.f32.mrb[17].mxu0 }
 0x3bf   : > { %v933_v0 = vpop.f32.mrb[18].mxu0 }
 0x3c0   : > { %949 = vrot.lane.b32.xlu1 %v933_v0, %s1411_s11  ;;  %v1182_v45 = vpop.f32.mrb[19].mxu0 }
 0x428   : > { %v940_v46 = vpop.permute.xlu0 %939 }
 0x429   : > { %v953_v48 = vsel %vm447_vm6, %v745_v35, %v940_v46 }
 0x42a   : > { %v942_v47 = vpop.permute.xlu1 %941 }
 0x42b   : > { %v954_v51 = vsel %vm447_vm6, %v748_v37, %v942_v47 }
 0x430   : > { %v948_v49 = vpop.permute.xlu0 %947 }
 0x431   : > { %v955_v50 = vsel %vm504_vm1, %v953_v48, %v948_v49 }
 0x432   : > { %958 = vst.msk [vmem:[%s390_s18] sm:$0xff] %vm957_vm7, %v955_v50  ;;  %v950_v52 = vpop.permute.xlu1 %949 }
 0x433   : > { %v956_v53 = vsel %vm504_vm1, %v954_v51, %v950_v52 }
 0x434   : > { %959 = vst.msk [vmem:[%s390_s18 + $0x8] sm:$0xff] %vm957_vm7, %v956_v53 }
 0x435   : > { %1343 = shalt.err (!%p1340_p11)
}
 0x436   : > { %s1344_s26 = scalar_lea.hbm %s1712_s24, 256  ;;  %s1348_s28 = scalar_lea.hbm %s1767_s9, 512 }
 0x437   : > { %p1345_p3 = scmp.ne.s32.totalorder %s1712_s24, %s1344_s26  ;;  %p1349_p2 = scmp.lt.u32.totalorder %s1712_s24, %s1767_s9 }
 0x438   : > { %p1350_p4 = scmp.lt.u32.totalorder %s1348_s28, %s1344_s26  ;;  %p1352_p13 = scmp.lt.u32.totalorder %s1344_s26, %s1712_s24 }
 0x439   : > { %p1346_p8 = pnand %p1345_p3, %p1792_p1 }
 0x43a   : > { %p1351_p6 = por %p1350_p4, %p1349_p2 }
 0x43b   : > { %p1347_p0 = pneg %p1346_p8 }
 0x43c   : > { %p1353_p12 = por %p1352_p13, %p1351_p6 }
 0x43e   : > { %p1354_p10 = pnand %p1353_p12, %p1347_p0 }
 0x440   : > { %1357 = shalt.err (!%p1354_p10)
}
 0x441   : > { %s1413_s25 = smov 128   ;;  %s1414_s14 = smov 8  }
 0x442   : > { %1187 = dma.vmem_to_hbm [thread:$0]  (%p1792_p1), %s1706_s17, 256, %s1712_s24, %s961_s13, %s1413_s25, %s1413_s25, %s1414_s14  }
 0x443 PF: > { %s989_s16 = sand.u32 1, %s1388_s30   ;;  %p1793_p5 = scmp.ne.s32.totalorder %s1783_s22, 0 }
 0x444   : > { %p1794_p7 = scmp.ge.s32.totalorder %s1400_s12, 2  ;;  %s990_s27 = scalar_lea.sflag [#allocation4], %s989_s16 }
 0x446   : > { %p1197_p9 = pnand %p1794_p7, %p1793_p5 }
 0x448   : > { %1383 = dma.done.wait (!%p1197_p9), %s990_s27, 256  }
 0x449   : > { %1385 = vsyncadd (!%p1197_p9), %s990_s27, 4294967040  ;;  %s1795_s12 = sld [smem:[#allocation12_spill]]  ;;  %s1796_s0 = sld [smem:[#allocation11_spill]] }
 0x44a   : > { %s1797_s11 = sld [smem:[#allocation13_spill]]  ;;  %s1798_s30 = smov %s1392_s10 }
 0x44f   : > { %p25_p11 = scmp.ge.s32.totalorder %s1795_s12, 4   ;;  %s1799_s10 = smov %s1796_s0 }
 0x451   :  { %27 = sbr.rel (!%p25_p11) target bundleno = 9 (0x9), region = 114 }
 0x458   :  { %995 = vsyncpa [#allocation3], 1 }
 0x459   :  { %997 = vsyncpa [#allocation3 + $0x1], 1 }
 0x45a   :  { %998 = vsyncpa [#allocation6], 1 }
 0x45b   :  { %1000 = vsyncpa [#allocation6 + $0x1], 1 }
 0x45c   :  { %1001 = vsyncpa [#allocation4], 1 }
 0x45d   :  { %1003 = vsyncpa [#allocation4 + $0x1], 1 }

</bundles_post_ra>
